<compile_context>
chip_gen: v7x
topology: tpu7x:2x2x1
jax: 0.10.0
libtpu: 0.0.40
codegen_flags: <defaults>
</compile_context>

<pallas_src>
import functools

import jax
import jax.numpy as jnp
from jax import lax
from jax.experimental import pallas as pl
from jax.experimental.pallas import tpu as pltpu

K = 7      # kernel_size
PAD = 3    # padding for kernel_size == 7


# ------------------------- weight -> fused conv operator -----------------------
def _reflect_index(idx, n):
    # PyTorch / jnp.pad 'reflect' (edge not repeated): -1 -> 1, n -> n-2
    idx = jnp.abs(idx)
    return jnp.where(idx >= n, 2 * (n - 1) - idx, idx)


def _build_conv_operator(w, H, W):
    """Fold reflect-pad + 7x7 conv (2->1 ch) into G (2*H*W, H*W) so that
    y_flat = [avg_flat | max_flat] @ G  ==  conv(reflect_pad([avg, mx]), w)."""
    HW = H * W
    w2 = w.reshape(2, K, K).astype(jnp.float32)           # OIHW with O=1 -> (in_c, kh, kw)
    ii = jnp.arange(H)[:, None]                            # (H, 1)
    jj = jnp.arange(W)[None, :]                            # (1, W)
    out_idx = (ii * W + jj).reshape(-1)                    # (HW,)
    G = jnp.zeros((2 * HW, HW), jnp.float32)
    for c in range(2):
        for ki in range(K):
            for kj in range(K):
                pi = _reflect_index(ii + (ki - PAD), H)    # (H, 1)
                pj = _reflect_index(jj + (kj - PAD), W)    # (1, W)
                src_idx = (pi * W + pj).reshape(-1)        # (HW,)
                # accumulate (reflection can map several taps to the same source)
                G = G.at[c * HW + src_idx, out_idx].add(w2[c, ki, kj])
    return G


# ------------------------------ block-size heuristic ---------------------------
def _choose_blocks(N, C, HW, itemsize):
    # Batch block: target ~512 KiB of x per grid step, but keep >=2 batch steps
    # when N >= 2 so the "parallel" batch axis can split across v7x TensorCores.
    bytes_per_batch = C * HW * itemsize
    nb = max(1, min(N, (512 * 1024) // max(bytes_per_batch, 1)))
    if N >= 2:
        nb = max(1, min(nb, N // 2))
    while N % nb:
        nb -= 1
    # Channel chunk: cap each (nb, tc, HW) input block at ~4 MiB so the
    # double-buffered pipeline stays well inside VMEM (v7x: 64 MiB physical).
    cap = 4 * 1024 * 1024
    tc = C
    if nb * C * HW * itemsize > cap:
        best = None
        for cand in range(8, C, 8):                # tc must be mult-of-8 (or == C)
            if C % cand == 0 and nb * cand * HW * itemsize <= cap:
                best = cand
        if best is not None:
            tc = best
        # TODO(synk): if C has no multiple-of-8 divisor under the cap, add a
        # masked tail chunk instead of falling back to the full-C block.
    return nb, tc


# --------------------------------- Pallas kernel --------------------------------
def _spatial_attention_kernel(x_ref, g_ref, o_ref, sum_ref, max_ref, *, inv_c):
    # x_ref   : (nb, tc, HW)   current batch-block / channel-chunk (lane-dense)
    # g_ref   : (2*HW, HW)     fused reflect-pad + conv operator (resident)
    # o_ref   : (nb, 1, HW)    sigmoid(conv([avg, max]))
    # sum_ref : (nb, HW) f32   running channel sum      (scratch accumulator)
    # max_ref : (nb, HW) f32   running channel max      (scratch accumulator)
    c_step = pl.program_id(1)

    @pl.when(c_step == 0)
    def _init():
        sum_ref[...] = jnp.zeros(sum_ref.shape, jnp.float32)
        max_ref[...] = jnp.full(max_ref.shape, -jnp.inf, jnp.float32)

    x = x_ref[...]                                               # native dtype
    sum_ref[...] += jnp.sum(x.astype(jnp.float32), axis=1)       # f32 accumulation
    max_ref[...] = jnp.maximum(max_ref[...],
                               jnp.max(x, axis=1).astype(jnp.float32))

    @pl.when(c_step == pl.num_programs(1) - 1)
    def _finalize():
        avg = sum_ref[...] * jnp.float32(inv_c)                           # (nb, HW)
        m = jnp.concatenate([avg, max_ref[...]], axis=-1)                 # (nb, 2*HW)
        y = jnp.dot(m, g_ref[...], preferred_element_type=jnp.float32)    # MXU matmul
        o_ref[...] = jax.nn.sigmoid(y).reshape(o_ref.shape).astype(o_ref.dtype)


# ----------------------------------- wrapper ------------------------------------
def spatial_attention(x, w):
    """x: (N, C, H, W); w: (1, 2, K, K) OIHW conv weight. Returns (N, 1, H, W)."""
    N, C, H, W = x.shape
    assert H > PAD and W > PAD, "reflect padding requires H > 3 and W > 3"
    HW = H * W
    itemsize = jnp.dtype(x.dtype).itemsize

    # TODO(synk): for very large H*W the dense (2*H*W, H*W) operator is quadratic;
    # switch the finalize step to a roll+mask tap loop there to keep VMEM linear.
    G = _build_conv_operator(w, H, W)                     # (2*HW, HW) f32

    nb, tc = _choose_blocks(N, C, HW, itemsize)
    x_flat = x.reshape(N, C, HW)                          # lane-dense spatial axis
    grid = (N // nb, pl.cdiv(C, tc))

    # VMEM budget (double-buffered blocks + resident operator + scratch) + margin.
    x_block = nb * tc * HW * itemsize
    g_bytes = 2 * HW * HW * 4
    o_block = nb * HW * itemsize
    scratch = 2 * nb * HW * 4
    vmem_needed = 2 * x_block + 2 * g_bytes + 2 * o_block + scratch
    vmem_limit = int(min(max(vmem_needed + (8 << 20), 32 << 20), 64 << 20))

    cost = pl.CostEstimate(
        flops=int(2 * N * C * HW + 2 * N * (2 * HW) * HW + 2 * N * HW),
        transcendentals=int(N * HW),
        bytes_accessed=int(N * C * HW * itemsize + g_bytes + N * HW * itemsize),
    )

    kernel = functools.partial(_spatial_attention_kernel, inv_c=1.0 / C)

    out = pl.pallas_call(
        kernel,
        out_shape=jax.ShapeDtypeStruct((N, 1, HW), x.dtype),
        grid=grid,
        in_specs=[
            pl.BlockSpec((nb, tc, HW), lambda n, c: (n, c, 0)),   # streamed x chunk
            pl.BlockSpec((2 * HW, HW), lambda n, c: (0, 0)),      # resident operator
        ],
        out_specs=pl.BlockSpec((nb, 1, HW), lambda n, c: (n, 0, 0)),
        scratch_shapes=[
            pltpu.VMEM((nb, HW), jnp.float32),   # running channel sum
            pltpu.VMEM((nb, HW), jnp.float32),   # running channel max
        ],
        compiler_params=pltpu.CompilerParams(
            dimension_semantics=("parallel", "arbitrary"),
            vmem_limit_bytes=vmem_limit,
        ),
        cost_estimate=cost,
    )(x_flat, G)
    return out.reshape(N, 1, H, W)


# ------------------------------- pure-JAX reference -----------------------------
def spatial_attention_ref(x, w):
    avg = jnp.mean(x, axis=1, keepdims=True)
    mx = jnp.max(x, axis=1, keepdims=True)
    m = jnp.concatenate([avg, mx], axis=1)                      # (N, 2, H, W)
    mp = jnp.pad(m, ((0, 0), (0, 0), (PAD, PAD), (PAD, PAD)), mode="reflect")
    y = lax.conv_general_dilated(
        mp, w, window_strides=(1, 1), padding="VALID",
        dimension_numbers=("NCHW", "OIHW", "NCHW"))
    return jax.nn.sigmoid(y)


if __name__ == "__main__":
    key = jax.random.PRNGKey(0)
    kx, kw = jax.random.split(key)

    N, C, H, W = 2, 4, 16, 16
    x = jax.random.normal(kx, (N, C, H, W), dtype=jnp.float32)

    # deterministic conv weight (Conv2d(2, 1, 7, bias=False) -> shape (1, 2, 7, 7))
    fan_in = 2 * K * K
    w = jax.random.uniform(kw, (1, 2, K, K), dtype=jnp.float32,
                           minval=-1.0, maxval=1.0) / jnp.sqrt(fan_in)

    out = jax.block_until_ready(spatial_attention(x, w))
    ref = jax.block_until_ready(spatial_attention_ref(x, w))

    assert out.shape == (N, 1, H, W), out.shape
    assert jnp.allclose(out, ref, atol=1e-4, rtol=1e-4), float(jnp.max(jnp.abs(out - ref)))

    print("KERNEL_OK")
</pallas_src>

<mosaic_0001>
module attributes {stable_mosaic.version = 11 : i64} {
  func.func @_spatial_attention_kernel(%arg0: i32, %arg1: i32, %arg2: memref<1x4x256xf32, #tpu.memory_space<vmem>>, %arg3: memref<512x256xf32, #tpu.memory_space<vmem>>, %arg4: memref<1x1x256xf32, #tpu.memory_space<vmem>>, %arg5: memref<1x256xf32, #tpu.memory_space<vmem>>, %arg6: memref<1x256xf32, #tpu.memory_space<vmem>>) attributes {dimension_semantics = [#tpu.dimension_semantics<parallel>, #tpu.dimension_semantics<arbitrary>], iteration_bounds = array<i64: 2, 1>, scalar_prefetch = 0 : i64, scratch_operands = 2 : i64, tpu.core_type = #tpu.core_type<tc>, window_params = [{transform_indices = @transform_0, window_bounds = array<i64: 1, 4, 256>}, {pipeline_mode = #tpu.pipeline_mode<synchronous>, transform_indices = @transform_1, window_bounds = array<i64: 512, 256>}, {transform_indices = @transform_2, window_bounds = array<i64: 1, 1, 256>}]} {
    %c0_i32 = arith.constant 0 : i32
    %0 = arith.cmpi eq, %arg1, %c0_i32 : i32
    %1 = arith.extui %0 : i1 to i32
    %c0_i32_0 = arith.constant 0 : i32
    %2 = arith.cmpi ne, %1, %c0_i32_0 : i32
    scf.if %2 {
      %cst_14 = arith.constant 0.000000e+00 : f32
      %15 = vector.broadcast %cst_14 : f32 to vector<1x256xf32>
      %c0_15 = arith.constant 0 : index
      %c0_16 = arith.constant 0 : index
      %16 = vector.load %arg5[%c0_15, %c0_16] : memref<1x256xf32, #tpu.memory_space<vmem>>, vector<1x256xf32>
      tpu.vector_store %arg5[%c0_15, %c0_16], %15 {strides = array<i32>} : memref<1x256xf32, #tpu.memory_space<vmem>>, vector<1x256xf32>,
      %cst_17 = arith.constant 0xFF800000 : f32
      %17 = vector.broadcast %cst_17 : f32 to vector<1x256xf32>
      %c0_18 = arith.constant 0 : index
      %c0_19 = arith.constant 0 : index
      %18 = vector.load %arg6[%c0_18, %c0_19] : memref<1x256xf32, #tpu.memory_space<vmem>>, vector<1x256xf32>
      tpu.vector_store %arg6[%c0_18, %c0_19], %17 {strides = array<i32>} : memref<1x256xf32, #tpu.memory_space<vmem>>, vector<1x256xf32>,
    } else {
    }
    %c0 = arith.constant 0 : index
    %c0_1 = arith.constant 0 : index
    %c0_2 = arith.constant 0 : index
    %3 = vector.load %arg2[%c0, %c0_1, %c0_2] : memref<1x4x256xf32, #tpu.memory_space<vmem>>, vector<1x4x256xf32>
    %c0_3 = arith.constant 0 : index
    %c0_4 = arith.constant 0 : index
    %4 = vector.load %arg5[%c0_3, %c0_4] : memref<1x256xf32, #tpu.memory_space<vmem>>, vector<1x256xf32>
    %cst = arith.constant dense<0.000000e+00> : vector<1x256xf32>
    %5 = vector.multi_reduction <add>, %3, %cst [1] : vector<1x4x256xf32> to vector<1x256xf32>
    %6 = arith.addf %4, %5 : vector<1x256xf32>
    %c0_5 = arith.constant 0 : index
    %c0_6 = arith.constant 0 : index
    %7 = vector.load %arg5[%c0_5, %c0_6] : memref<1x256xf32, #tpu.memory_space<vmem>>, vector<1x256xf32>
    tpu.vector_store %arg5[%c0_5, %c0_6], %6 {strides = array<i32>} : memref<1x256xf32, #tpu.memory_space<vmem>>, vector<1x256xf32>,
    %c0_7 = arith.constant 0 : index
    %c0_8 = arith.constant 0 : index
    %8 = vector.load %arg6[%c0_7, %c0_8] : memref<1x256xf32, #tpu.memory_space<vmem>>, vector<1x256xf32>
    %cst_9 = arith.constant dense<0xFF800000> : vector<1x256xf32>
    %9 = vector.multi_reduction <maximumf>, %3, %cst_9 [1] : vector<1x4x256xf32> to vector<1x256xf32>
    %10 = arith.maximumf %8, %9 : vector<1x256xf32>
    %c0_10 = arith.constant 0 : index
    %c0_11 = arith.constant 0 : index
    %11 = vector.load %arg6[%c0_10, %c0_11] : memref<1x256xf32, #tpu.memory_space<vmem>>, vector<1x256xf32>
    tpu.vector_store %arg6[%c0_10, %c0_11], %10 {strides = array<i32>} : memref<1x256xf32, #tpu.memory_space<vmem>>, vector<1x256xf32>,
    %c0_i32_12 = arith.constant 0 : i32
    %12 = arith.cmpi eq, %arg1, %c0_i32_12 : i32
    %13 = arith.extui %12 : i1 to i32
    %c0_i32_13 = arith.constant 0 : i32
    %14 = arith.cmpi ne, %13, %c0_i32_13 : i32
    scf.if %14 {
      %c0_14 = arith.constant 0 : index
      %c0_15 = arith.constant 0 : index
      %15 = vector.load %arg5[%c0_14, %c0_15] : memref<1x256xf32, #tpu.memory_space<vmem>>, vector<1x256xf32>
      %cst_16 = arith.constant 2.500000e-01 : f32
      %16 = vector.broadcast %cst_16 : f32 to vector<1x256xf32>
      %17 = arith.mulf %15, %16 : vector<1x256xf32>
      %c0_17 = arith.constant 0 : index
      %c0_18 = arith.constant 0 : index
      %18 = vector.load %arg6[%c0_17, %c0_18] : memref<1x256xf32, #tpu.memory_space<vmem>>, vector<1x256xf32>
      %19 = tpu.concatenate %17, %18 in 1 : vector<1x256xf32>, vector<1x256xf32> -> vector<1x512xf32>
      %c0_19 = arith.constant 0 : index
      %c0_20 = arith.constant 0 : index
      %20 = vector.load %arg3[%c0_19, %c0_20] : memref<512x256xf32, #tpu.memory_space<vmem>>, vector<512x256xf32>
      %cst_21 = arith.constant dense<0.000000e+00> : vector<1x256xf32>
      %21 = tpu.matmul %19, %20, %cst_21 {dimension_numbers = #tpu.dot_dimension_numbers<[1], [0], [0], [1], [0, 0, 1, 1], [], []>} : vector<1x512xf32>, vector<512x256xf32>, vector<1x256xf32> -> vector<1x256xf32>
      %22 = arith.negf %21 : vector<1x256xf32>
      %23 = math.exp %22 : vector<1x256xf32>
      %cst_22 = arith.constant 1.000000e+00 : f32
      %24 = vector.broadcast %cst_22 : f32 to vector<1x256xf32>
      %25 = arith.addf %24, %23 : vector<1x256xf32>
      %26 = arith.divf %24, %25 : vector<1x256xf32>
      %27 = vector.shape_cast %26 : vector<1x256xf32> to vector<1x1x256xf32>
      %c0_23 = arith.constant 0 : index
      %c0_24 = arith.constant 0 : index
      %c0_25 = arith.constant 0 : index
      %28 = vector.load %arg4[%c0_23, %c0_24, %c0_25] : memref<1x1x256xf32, #tpu.memory_space<vmem>>, vector<1x1x256xf32>
      tpu.vector_store %arg4[%c0_23, %c0_24, %c0_25], %27 {strides = array<i32>} : memref<1x1x256xf32, #tpu.memory_space<vmem>>, vector<1x1x256xf32>,
    } else {
    }
    return
  }
  func.func @transform_0(%arg0: i32, %arg1: i32) -> (i32, i32, i32) {
    %c0_i32 = arith.constant 0 : i32
    %c0_i32_0 = arith.constant 0 : i32
    return %arg0, %arg1, %c0_i32 : i32, i32, i32
  }
  func.func @transform_1(%arg0: i32, %arg1: i32) -> (i32, i32) {
    %c0_i32 = arith.constant 0 : i32
    %c0_i32_0 = arith.constant 0 : i32
    %c0_i32_1 = arith.constant 0 : i32
    return %c0_i32, %c0_i32_0 : i32, i32
  }
  func.func @transform_2(%arg0: i32, %arg1: i32) -> (i32, i32, i32) {
    %c0_i32 = arith.constant 0 : i32
    %c0_i32_0 = arith.constant 0 : i32
    %c0_i32_1 = arith.constant 0 : i32
    return %arg0, %c0_i32, %c0_i32_0 : i32, i32, i32
  }
}

</mosaic_0001>

<bundles_post_ra>
// kernel: tpu_custom_call.1
= control target key start
LH: loop header
LB: loop body
LE: loop exit
PB: predicated region body
PF: predicated region fallthrough
CT: control target
= control target key end

     0   :  { %7 = vsyncpa [#allocation5], 0  ;;  %s1373_s0 = inlined_call_operand.hbm [shape: f32[2,4,256], index: 0, kind: input, shape index: {}]   ;;  %s1374_s1 = inlined_call_operand.hbm [shape: f32[512,256], index: 1, kind: input, shape index: {}]   ;;  %s1375_s2 = inlined_call_operand.hbm [shape: f32[2,1,256], index: 2, kind: output, shape index: {}]  }
   0x1   :  { %9 = vsyncpa [#allocation5 + $0x1], 0 }
   0x2   :  { %10 = vsyncpa [#allocation8], 0 }
   0x3   :  { %11 = vsyncpa [#allocation6], 0 }
   0x4   :  { %13 = vsyncpa [#allocation6 + $0x1], 0  ;;  %s1122_s9 = smov 0   ;;  %s1124_s10 = smov 0  }
   0x5   :  { %s1126_s11 = smov 0   ;;  %s1128_s12 = smov 0  }
   0x6   :  { %s1130_s13 = smov 0   ;;  %s1132_s14 = smov 0  }
   0x7 LB: > { %s715_s15 = sadd.s32 4294967295, %s1097_s14   ;;  %s716_s16 = sadd.s32 4294967294, %s1097_s14   ;;  %s1097_s14 = sphi %s1132_s14, %s19_s14   ;;  %s1093_s13 = sphi %s1130_s13, %s1401_s13   ;;  %s1089_s12 = sphi %s1128_s12, %s1400_s12   ;;  %s1085_s11 = sphi %s1126_s11, %s1399_s11   ;;  %s1081_s10 = sphi %s1124_s10, %s1398_s10   ;;  %s1077_s9 = sphi %s1122_s9, %s1397_s9  }
   0x8   : > { %p53_p0 = scmp.ne.s32.totalorder %s1081_s10, %s1077_s9  ;;  %p1156_p1 = scmp.eq.s32.totalorder %s715_s15, 0 }
   0x9   : > { %p1160_p2 = scmp.eq.s32.totalorder %s715_s15, 1  ;;  %p104_p3 = scmp.eq.s32.totalorder %s716_s16, 1 }
   0xa   : > { %s1380_s17 = scalar_select %p1156_p1, 1, 0 }
   0xb   : > { %s1381_s18 = scalar_select %p1160_p2, 1, 0 }
   0xc   : > { %p1166_p4 = por %p1156_p1, %p53_p0  ;;  %p717_p5 = scmp.ge.s32.totalorder %s1097_s14, 1 }
   0xd   : > { %p1171_p6 = por %p104_p3, %p53_p0  ;;  %p111_p7 = scmp.lt.s32.totalorder %s1097_s14, 3 }
   0xe   : > { %s1382_s19 = scalar_select %p1166_p4, 1, 0 }
   0xf   : > { %s1383_s20 = scalar_select %p1171_p6, 1, 0 }
  0x10   : > { %p1176_p8 = pnand %p717_p5, %p111_p7  ;;  %s1099_s22 = smov [#allocation7]  }
  0x11   : > { %s123_s23 = sshll.u32 %s1099_s22, 4  ;;  %s31_s25 = sadd.s32 1, %s1093_s13  ;;  %s124_s23 = int_to_ptr.vmem [resolvable:$true] %s123_s23 }
  0x12   : > { %s1384_s21 = scalar_select %p1176_p8, 1, 0 }
  0x13   : > { %p874_p9 = pneg %p1176_p8  ;;  %s953_s28 = scalar_lea.hbm %s1374_s1, 16384 }
  0x14   : > { %p954_p12 = scmp.ne.s32.totalorder %s1374_s1, %s953_s28  ;;  %p960_p5 = scmp.lt.u32.totalorder %s953_s28, %s1374_s1 }
  0x15   : > { %p1185_p11 = pnand %p874_p9, %p1156_p1 }
  0x17   : > { %p955_p13 = pneg %p1185_p11 }
  0x19   : > { %p956_p0 = pnand %p955_p13, %p954_p12 }
  0x1b   : > { %p957_p3 = pneg %p956_p0 }
  0x1d   : > { %p962_p7 = pnand %p960_p5, %p957_p3 }
  0x1f   : > { %965 = shalt.err (!%p962_p7)
}
  0x20   : > { %s966_s5 = scalar_lea.vmem %s124_s23, 16384  ;;  %p974_p1 = scmp.lt.s32.totalorder %s124_s23, %s124_s23 }
  0x21   : > { %p967_p9 = scmp.ne.s32.totalorder %s124_s23, %s966_s5  ;;  %p975_p4 = scmp.lt.s32.totalorder %s966_s5, %s966_s5 }
  0x23   : > { %p969_p10 = pnand %p967_p9, %p955_p13  ;;  %p976_p8 = por %p975_p4, %p974_p1 }
  0x25   : > { %p970_p6 = pneg %p969_p10 }
  0x27   : > { %p977_p2 = pnand %p976_p8, %p970_p6 }
  0x29   : > { %980 = shalt.err (!%p977_p2)
}
  0x2a   : > { %s1100_s6 = smov 256   ;;  %s1101_s7 = smov 16  }
  0x2b   : > { %877 = dma.hbm_to_vmem [thread:$0]  (!%p1185_p11), %s1374_s1, 16384, %s124_s23, [#allocation8], %s1100_s6, %s1100_s6, %s1101_s7  }
  0x2c   : > { %p33_p1 = scmp.ge.s32.totalorder %s31_s25, 2  ;;  %s40_s16 = sadd.s32 1, %s1085_s11 }
  0x2d   : > { %p47_p2 = scmp.ne.s32.totalorder %s1085_s11, %s1081_s10  ;;  %p48_p4 = scmp.eq.s32.totalorder %s1097_s14, 0 }
  0x2e   : > { %s1403_s25 = smov (%p33_p1, %s31_s25), 0  ;;  %p1387_p8 = scmp.ne.s32.totalorder %s1381_s18, 0 }
  0x2f   : > { %p1212_p6 = por %p48_p4, %p47_p2  ;;  %s35_s24 = ssub.s32 %s1093_s13, %s1403_s25 }
  0x30   : > { %p1218_p10 = por %p1387_p8, %p47_p2  ;;  %p887_p12 = scmp.lt.s32.totalorder %s1097_s14, 2 }
  0x31   : > { %p38_p11 = scmp.eq.s32.totalorder %s35_s24, 0  ;;  %s137_s23 = sand.u32 1, %s1085_s11  }
  0x32   : > { %s720_s27 = sshll.u32 %s137_s23, 3  ;;  %s734_s29 = sshll.u32 %s1093_s13, 7 }
  0x33   : > { %s1227_s28 = scalar_select %p38_p11, %s1085_s11, %s40_s16  }
  0x34   : > { %s1233_s4 = scalar_lea.hbm %s1373_s0, %s734_s29  ;;  %s141_s18 = scalar_lea.vmem [#allocation4], %s720_s27 }
  0x35   : > { %s151_s5 = sshll.u32 %s141_s18, 4  ;;  %p1239_p13 = pnand %p887_p12, %p1212_p6  ;;  %s1235_s5 = int_to_ptr.vmem [resolvable:$true] %s151_s5 }
  0x36   : > { %s138_s7 = scalar_lea.sflag [#allocation5], %s137_s23  ;;  %s981_s8 = scalar_lea.hbm %s1233_s4, 128 }
  0x37   : > { %p982_p0 = scmp.ne.s32.totalorder %s1233_s4, %s981_s8  ;;  %p983_p3 = pneg %p1239_p13 }
  0x38   : > { %s986_s24 = scalar_lea.hbm %s1373_s0, 256  ;;  %p987_p9 = scmp.lt.u32.totalorder %s1233_s4, %s1373_s0 }
  0x39   : > { %p984_p5 = pnand %p983_p3, %p982_p0  ;;  %p988_p1 = scmp.lt.u32.totalorder %s986_s24, %s981_s8 }
  0x3a   : > { %p990_p4 = scmp.lt.u32.totalorder %s981_s8, %s1233_s4 }
  0x3b   : > { %p985_p7 = pneg %p984_p5  ;;  %p989_p2 = por %p988_p1, %p987_p9 }
  0x3d   : > { %p991_p6 = por %p990_p4, %p989_p2 }
  0x3f   : > { %p992_p8 = pnand %p991_p6, %p985_p7 }
  0x41   : > { %995 = shalt.err (!%p992_p8)
}
  0x42   : > { %s996_s23 = scalar_lea.vmem %s1235_s5, 128  ;;  %s1102_s29 = smov [#allocation4]  }
  0x43   : > { %p997_p12 = scmp.ne.s32.totalorder %s1235_s5, %s996_s23  ;;  %s1001_s30 = sshll.u32 %s1102_s29, 4  ;;  %s1002_s30 = int_to_ptr.vmem [resolvable:$false] %s1001_s30 }
  0x44   : > { %s1003_s3 = scalar_lea.vmem %s1002_s30, 256  ;;  %p1004_p5 = scmp.lt.s32.totalorder %s1235_s5, %s1002_s30 }
  0x45   : > { %p999_p11 = pnand %p997_p12, %p983_p3  ;;  %p1005_p9 = scmp.lt.s32.totalorder %s1003_s3, %s996_s23 }
  0x47   : > { %p1000_p0 = pneg %p999_p11  ;;  %p1006_p1 = por %p1005_p9, %p1004_p5 }
  0x49   : > { %p1007_p2 = pnand %p1006_p1, %p1000_p0 }
  0x4b   : > { %1010 = shalt.err (!%p1007_p2)
}
  0x4c   : > { %881 = dma.hbm_to_vmem [thread:$0]  (!%p1239_p13), %s1233_s4, 128, %s1235_s5, %s138_s7  }
  0x4d   : > { %p1390_p7 = scmp.ne.s32.totalorder %s1384_s21, 0 }
  0x4e   : > { %s1271_s18 = sand.u32 (!%p1390_p7), 1, %s1081_s10   ;;  %p1391_p3 = scmp.ne.s32.totalorder (!%p1390_p7), %s1382_s19, 0 }
  0x4f   : > { %160 = sbr.rel (%p1390_p7) target bundleno = 423 (0x1a7), region = 28  ;;  %s724_s8 = sshll.u32 (!%p1390_p7), %s1271_s18, 3 }
  0x50   : > { %s163_s15 = scalar_lea.sflag (!%p1390_p7), [#allocation5], %s1271_s18  ;;  %s1275_s16 = scalar_lea.vmem (!%p1390_p7), [#allocation4], %s724_s8 }
  0x56   : > { %1064 = dma.done.wait (%p1391_p3), %s163_s15, 128  }
  0x57   : > { %1066 = vsyncadd (%p1391_p3), %s163_s15, 4294967168  ;;  %p1392_p13 = scmp.ne.s32.totalorder %s1380_s17, 0 }
  0x59   : > { %1068 = dma.done.wait (%p1392_p13), [#allocation8], 16384  }
  0x5a   : > { %1070 = vsyncadd (%p1392_p13), [#allocation8], 4294950912  ;;  %v195_v0 = vlaneseq  ;;  %v1103_v2 = vmov 0.0   ;;  %v1104_v3 = vmov -inf   ;;  %v309_v4 = vld [vmem:[#allocation7 + $0x8] sm:$0xff]  ;;  %v311_v5 = vld [vmem:[#allocation7 + $0x18] sm:$0xff] }
  0x5b   : > { %v373_v6 = vld [vmem:[#allocation7 + $0x208] sm:$0xff]  ;;  %v736_v7 = vpack.c.bf16 %v311_v5, %v309_v4  ;;  %v375_v8 = vld [vmem:[#allocation7 + $0x218] sm:$0xff]  ;;  %v308_v9 = vld [vmem:[#allocation7] sm:$0xff]  ;;  %vm206_vm1 = vcmask 1043456   ;;  %s726_s17 = sshll.u32 %s1271_s18, 1  ;;  %s735_s19 = sshll.u32 %s1089_s12, 5 }
  0x5c   : > { %vm1286_vm0 = vcmp.lt.s32.totalorder %v195_v0, 256  ;;  %v310_v10 = vld [vmem:[#allocation7 + $0x10] sm:$0xff]  ;;  %v800_v11 = vpack.c.bf16 %v375_v8, %v373_v6  ;;  %v372_v13 = vld [vmem:[#allocation7 + $0x200] sm:$0xff]  ;;  %v313_v15 = vld [vmem:[#allocation7 + $0x28] sm:$0xff]  ;;  %s190_s21 = scalar_lea.vmem [#allocation9], %s726_s17  ;;  %s1322_s7 = scalar_lea.hbm %s1375_s2, %s735_s19 }
  0x5d   : > { %199 = vst.msk [vmem:[#allocation2] sm:$0x3] %vm1286_vm0, %v1103_v2  ;;  %200 = vst.msk [vmem:[#allocation3] sm:$0x3] %vm1286_vm0, %v1104_v3  ;;  %v738_v12 = vpack.c.bf16 %v310_v10, %v308_v9  ;;  %v374_v14 = vld [vmem:[#allocation7 + $0x210] sm:$0xff]  ;;  %737 = vmatprep.subr.bf16.mxu1 %v736_v7  ;;  %v315_v17 = vld [vmem:[#allocation7 + $0x38] sm:$0xff] }
  0x5e   : > { %v802_v16 = vpack.c.bf16 %v374_v14, %v372_v13  ;;  %v377_v18 = vld [vmem:[#allocation7 + $0x228] sm:$0xff]  ;;  %v379_v19 = vld [vmem:[#allocation7 + $0x238] sm:$0xff]  ;;  %801 = vmatprep.subr.bf16.mxu0 %v800_v11  ;;  %v740_v20 = vpack.c.bf16 %v315_v17, %v313_v15  ;;  %v312_v22 = vld [vmem:[#allocation7 + $0x20] sm:$0xff]  ;;  %s624_s4 = sshll.u32 %s190_s21, 4  ;;  %s610_s12 = scalar_lea.sflag [#allocation6], %s1271_s18  ;;  %s1324_s4 = int_to_ptr.vmem [resolvable:$true] %s624_s4 }
  0x5f   : > { %739 = vmatpush1.bf16.msra.mxu1 %v738_v12  ;;  %v804_v21 = vpack.c.bf16 %v379_v19, %v377_v18  ;;  %v314_v23 = vld [vmem:[#allocation7 + $0x30] sm:$0xff]  ;;  %v376_v24 = vld [vmem:[#allocation7 + $0x220] sm:$0xff]  ;;  %v317_v27 = vld [vmem:[#allocation7 + $0x48] sm:$0xff]  ;;  %s1011_s24 = scalar_lea.vmem %s1324_s4, 32  ;;  %s1106_s22 = smov [#allocation9]  }
  0x60   : > { %803 = vmatpush1.bf16.msra.mxu0 %v802_v16  ;;  %v742_v25 = vpack.c.bf16 %v314_v23, %v312_v22  ;;  %v378_v26 = vld [vmem:[#allocation7 + $0x230] sm:$0xff]  ;;  %v319_v28 = vld [vmem:[#allocation7 + $0x58] sm:$0xff]  ;;  %741 = vmatprep.subr.bf16.mxu1 %v740_v20  ;;  %v381_v31 = vld [vmem:[#allocation7 + $0x248] sm:$0xff]  ;;  %p1012_p4 = scmp.ne.s32.totalorder %s1324_s4, %s1011_s24  ;;  %s1015_s27 = sshll.u32 %s1106_s22, 4  ;;  %s1016_s27 = int_to_ptr.vmem [resolvable:$false] %s1015_s27 }
  0x61   : > { %805 = vmatprep.subr.bf16.mxu0 %v804_v21  ;;  %v806_v29 = vpack.c.bf16 %v378_v26, %v376_v24  ;;  %v744_v30 = vpack.c.bf16 %v319_v28, %v317_v27  ;;  %v383_v32 = vld [vmem:[#allocation7 + $0x258] sm:$0xff]  ;;  %v316_v33 = vld [vmem:[#allocation7 + $0x40] sm:$0xff]  ;;  %v318_v35 = vld [vmem:[#allocation7 + $0x50] sm:$0xff]  ;;  %s1017_s23 = scalar_lea.vmem %s1016_s27, 64  ;;  %p1018_p12 = scmp.lt.s32.totalorder %s1324_s4, %s1016_s27 }
  0x62   : > { %v808_v34 = vpack.c.bf16 %v383_v32, %v381_v31  ;;  %v380_v36 = vld [vmem:[#allocation7 + $0x240] sm:$0xff]  ;;  %v382_v37 = vld [vmem:[#allocation7 + $0x250] sm:$0xff]  ;;  %v746_v38 = vpack.c.bf16 %v318_v35, %v316_v33  ;;  %v321_v39 = vld [vmem:[#allocation7 + $0x68] sm:$0xff]  ;;  %p1013_p6 = pnand %p1012_p4, %p1218_p10  ;;  %p1019_p11 = scmp.lt.s32.totalorder %s1017_s23, %s1011_s24 }
  0x63   : > { %743 = vmatpush1.bf16.msra.mxu1 %v742_v25  ;;  %v323_v40 = vld [vmem:[#allocation7 + $0x78] sm:$0xff]  ;;  %v385_v41 = vld [vmem:[#allocation7 + $0x268] sm:$0xff]  ;;  %v810_v42 = vpack.c.bf16 %v382_v37, %v380_v36  ;;  %v320_v45 = vld [vmem:[#allocation7 + $0x60] sm:$0xff] }
  0x64   : > { %807 = vmatpush1.bf16.msra.mxu0 %v806_v29  ;;  %745 = vmatprep.subr.bf16.mxu1 %v744_v30  ;;  %v748_v43 = vpack.c.bf16 %v323_v40, %v321_v39  ;;  %v387_v44 = vld [vmem:[#allocation7 + $0x278] sm:$0xff]  ;;  %v322_v46 = vld [vmem:[#allocation7 + $0x70] sm:$0xff]  ;;  %v384_v48 = vld [vmem:[#allocation7 + $0x260] sm:$0xff]  ;;  %p1014_p8 = pneg %p1013_p6  ;;  %p1020_p0 = por %p1019_p11, %p1018_p12 }
  0x65   : > { %809 = vmatprep.subr.bf16.mxu0 %v808_v34  ;;  %v812_v47 = vpack.c.bf16 %v387_v44, %v385_v41  ;;  %v386_v49 = vld [vmem:[#allocation7 + $0x270] sm:$0xff]  ;;  %v325_v50 = vld [vmem:[#allocation7 + $0x88] sm:$0xff]  ;;  %v327_v51 = vld [vmem:[#allocation7 + $0x98] sm:$0xff]  ;;  %v750_v54 = vpack.c.bf16 %v322_v46, %v320_v45 }
  0x66   : > { %v389_v52 = vld [vmem:[#allocation7 + $0x288] sm:$0xff]  ;;  %v391_v53 = vld [vmem:[#allocation7 + $0x298] sm:$0xff]  ;;  %v814_v55 = vpack.c.bf16 %v386_v49, %v384_v48  ;;  %v752_v56 = vpack.c.bf16 %v327_v51, %v325_v50  ;;  %v324_v57 = vld [vmem:[#allocation7 + $0x80] sm:$0xff]  ;;  %p1021_p5 = pnand %p1020_p0, %p1014_p8 }
  0x67   : > { %747 = vmatpush1.bf16.msra.mxu1 %v746_v38  ;;  %v326_v58 = vld [vmem:[#allocation7 + $0x90] sm:$0xff]  ;;  %v388_v59 = vld [vmem:[#allocation7 + $0x280] sm:$0xff]  ;;  %v816_v60 = vpack.c.bf16 %v391_v53, %v389_v52  ;;  %v329_v62 = vld [vmem:[#allocation7 + $0xa8] sm:$0xff] }
  0x68   : > { %811 = vmatpush1.bf16.msra.mxu0 %v810_v42  ;;  %749 = vmatprep.subr.bf16.mxu1 %v748_v43  ;;  %v390_v61 = vld [vmem:[#allocation7 + $0x290] sm:$0xff]  ;;  %v331_v63 = vld [vmem:[#allocation7 + $0xb8] sm:$0xff]  ;;  %v393_v2 = vld [vmem:[#allocation7 + $0x2a8] sm:$0xff]  ;;  %v754_v4 = vpack.c.bf16 %v326_v58, %v324_v57 }
  0x69   : > { %813 = vmatprep.subr.bf16.mxu0 %v812_v47  ;;  %v395_v3 = vld [vmem:[#allocation7 + $0x2b8] sm:$0xff]  ;;  %v818_v5 = vpack.c.bf16 %v390_v61, %v388_v59  ;;  %v756_v6 = vpack.c.bf16 %v331_v63, %v329_v62  ;;  %v328_v7 = vld [vmem:[#allocation7 + $0xa0] sm:$0xff]  ;;  %v330_v8 = vld [vmem:[#allocation7 + $0xb0] sm:$0xff] }
  0x6a   : > { %v392_v9 = vld [vmem:[#allocation7 + $0x2a0] sm:$0xff]  ;;  %v820_v10 = vpack.c.bf16 %v395_v3, %v393_v2  ;;  %v394_v11 = vld [vmem:[#allocation7 + $0x2b0] sm:$0xff]  ;;  %v333_v12 = vld [vmem:[#allocation7 + $0xc8] sm:$0xff]  ;;  %v758_v16 = vpack.c.bf16 %v330_v8, %v328_v7 }
  0x6b   : > { %751 = vmatpush1.bf16.msra.mxu1 %v750_v54  ;;  %v335_v13 = vld [vmem:[#allocation7 + $0xd8] sm:$0xff]  ;;  %v397_v14 = vld [vmem:[#allocation7 + $0x2c8] sm:$0xff]  ;;  %v822_v17 = vpack.c.bf16 %v394_v11, %v392_v9  ;;  %v332_v19 = vld [vmem:[#allocation7 + $0xc0] sm:$0xff] }
  0x6c   : > { %815 = vmatpush1.bf16.msra.mxu0 %v814_v55  ;;  %753 = vmatprep.subr.bf16.mxu1 %v752_v56  ;;  %v399_v15 = vld [vmem:[#allocation7 + $0x2d8] sm:$0xff]  ;;  %v760_v18 = vpack.c.bf16 %v335_v13, %v333_v12  ;;  %v334_v20 = vld [vmem:[#allocation7 + $0xd0] sm:$0xff]  ;;  %v396_v21 = vld [vmem:[#allocation7 + $0x2c0] sm:$0xff] }
  0x6d   : > { %817 = vmatprep.subr.bf16.mxu0 %v816_v60  ;;  %v824_v22 = vpack.c.bf16 %v399_v15, %v397_v14  ;;  %v398_v23 = vld [vmem:[#allocation7 + $0x2d0] sm:$0xff]  ;;  %v337_v24 = vld [vmem:[#allocation7 + $0xe8] sm:$0xff]  ;;  %v339_v25 = vld [vmem:[#allocation7 + $0xf8] sm:$0xff]  ;;  %v762_v28 = vpack.c.bf16 %v334_v20, %v332_v19 }
  0x6e   : > { %v401_v26 = vld [vmem:[#allocation7 + $0x2e8] sm:$0xff]  ;;  %v403_v27 = vld [vmem:[#allocation7 + $0x2f8] sm:$0xff]  ;;  %v826_v29 = vpack.c.bf16 %v398_v23, %v396_v21  ;;  %v764_v30 = vpack.c.bf16 %v339_v25, %v337_v24  ;;  %v336_v31 = vld [vmem:[#allocation7 + $0xe0] sm:$0xff] }
  0x6f   : > { %755 = vmatpush1.bf16.msra.mxu1 %v754_v4  ;;  %v338_v32 = vld [vmem:[#allocation7 + $0xf0] sm:$0xff]  ;;  %v400_v33 = vld [vmem:[#allocation7 + $0x2e0] sm:$0xff]  ;;  %v828_v34 = vpack.c.bf16 %v403_v27, %v401_v26  ;;  %v341_v36 = vld [vmem:[#allocation7 + $0x108] sm:$0xff] }
  0x70   : > { %819 = vmatpush1.bf16.msra.mxu0 %v818_v5  ;;  %757 = vmatprep.subr.bf16.mxu1 %v756_v6  ;;  %v402_v35 = vld [vmem:[#allocation7 + $0x2f0] sm:$0xff]  ;;  %v343_v37 = vld [vmem:[#allocation7 + $0x118] sm:$0xff]  ;;  %v405_v38 = vld [vmem:[#allocation7 + $0x308] sm:$0xff]  ;;  %v766_v40 = vpack.c.bf16 %v338_v32, %v336_v31 }
  0x71   : > { %821 = vmatprep.subr.bf16.mxu0 %v820_v10  ;;  %v407_v39 = vld [vmem:[#allocation7 + $0x318] sm:$0xff]  ;;  %v830_v41 = vpack.c.bf16 %v402_v35, %v400_v33  ;;  %v768_v42 = vpack.c.bf16 %v343_v37, %v341_v36  ;;  %v340_v43 = vld [vmem:[#allocation7 + $0x100] sm:$0xff]  ;;  %v342_v44 = vld [vmem:[#allocation7 + $0x110] sm:$0xff] }
  0x72   : > { %v404_v45 = vld [vmem:[#allocation7 + $0x300] sm:$0xff]  ;;  %v832_v46 = vpack.c.bf16 %v407_v39, %v405_v38  ;;  %v406_v47 = vld [vmem:[#allocation7 + $0x310] sm:$0xff]  ;;  %v345_v48 = vld [vmem:[#allocation7 + $0x128] sm:$0xff]  ;;  %v770_v52 = vpack.c.bf16 %v342_v44, %v340_v43 }
  0x73   : > { %759 = vmatpush1.bf16.msra.mxu1 %v758_v16  ;;  %v347_v49 = vld [vmem:[#allocation7 + $0x138] sm:$0xff]  ;;  %v409_v50 = vld [vmem:[#allocation7 + $0x328] sm:$0xff]  ;;  %v834_v53 = vpack.c.bf16 %v406_v47, %v404_v45  ;;  %v344_v55 = vld [vmem:[#allocation7 + $0x120] sm:$0xff] }
  0x74   : > { %823 = vmatpush1.bf16.msra.mxu0 %v822_v17  ;;  %761 = vmatprep.subr.bf16.mxu1 %v760_v18  ;;  %v411_v51 = vld [vmem:[#allocation7 + $0x338] sm:$0xff]  ;;  %v772_v54 = vpack.c.bf16 %v347_v49, %v345_v48  ;;  %v346_v56 = vld [vmem:[#allocation7 + $0x130] sm:$0xff]  ;;  %v408_v57 = vld [vmem:[#allocation7 + $0x320] sm:$0xff] }
  0x75   : > { %825 = vmatprep.subr.bf16.mxu0 %v824_v22  ;;  %v836_v58 = vpack.c.bf16 %v411_v51, %v409_v50  ;;  %v410_v59 = vld [vmem:[#allocation7 + $0x330] sm:$0xff]  ;;  %v349_v60 = vld [vmem:[#allocation7 + $0x148] sm:$0xff]  ;;  %v351_v61 = vld [vmem:[#allocation7 + $0x158] sm:$0xff]  ;;  %v774_v2 = vpack.c.bf16 %v346_v56, %v344_v55  ;;  %v1105_v51 = vmov 1966171168  }
  0x76   : > { %v413_v62 = vld [vmem:[#allocation7 + $0x348] sm:$0xff]  ;;  %v415_v63 = vld [vmem:[#allocation7 + $0x358] sm:$0xff]  ;;  %v838_v3 = vpack.c.bf16 %v410_v59, %v408_v57  ;;  %v776_v4 = vpack.c.bf16 %v351_v61, %v349_v60  ;;  %v348_v5 = vld [vmem:[#allocation7 + $0x140] sm:$0xff] }
  0x77   : > { %763 = vmatpush1.bf16.msra.mxu1 %v762_v28  ;;  %v350_v6 = vld [vmem:[#allocation7 + $0x150] sm:$0xff]  ;;  %v412_v7 = vld [vmem:[#allocation7 + $0x340] sm:$0xff]  ;;  %v840_v8 = vpack.c.bf16 %v415_v63, %v413_v62  ;;  %v353_v10 = vld [vmem:[#allocation7 + $0x168] sm:$0xff] }
  0x78   : > { %827 = vmatpush1.bf16.msra.mxu0 %v826_v29  ;;  %765 = vmatprep.subr.bf16.mxu1 %v764_v30  ;;  %v414_v9 = vld [vmem:[#allocation7 + $0x350] sm:$0xff]  ;;  %v355_v11 = vld [vmem:[#allocation7 + $0x178] sm:$0xff]  ;;  %v417_v12 = vld [vmem:[#allocation7 + $0x368] sm:$0xff]  ;;  %v778_v14 = vpack.c.bf16 %v350_v6, %v348_v5 }
  0x79   : > { %829 = vmatprep.subr.bf16.mxu0 %v828_v34  ;;  %v419_v13 = vld [vmem:[#allocation7 + $0x378] sm:$0xff]  ;;  %v352_v15 = vld [vmem:[#allocation7 + $0x160] sm:$0xff]  ;;  %v354_v16 = vld [vmem:[#allocation7 + $0x170] sm:$0xff]  ;;  %v842_v18 = vpack.c.bf16 %v414_v9, %v412_v7  ;;  %v780_v19 = vpack.c.bf16 %v355_v11, %v353_v10 }
  0x7a   : > { %v416_v17 = vld [vmem:[#allocation7 + $0x360] sm:$0xff]  ;;  %v418_v20 = vld [vmem:[#allocation7 + $0x370] sm:$0xff]  ;;  %v357_v21 = vld [vmem:[#allocation7 + $0x188] sm:$0xff]  ;;  %v844_v23 = vpack.c.bf16 %v419_v13, %v417_v12  ;;  %v782_v30 = vpack.c.bf16 %v354_v16, %v352_v15  ;;  %v1300_v12 = vshrl.u32 %v195_v0, 7 }
  0x7b   : > { %767 = vmatpush1.bf16.msra.mxu1 %v766_v40  ;;  %v359_v22 = vld [vmem:[#allocation7 + $0x198] sm:$0xff]  ;;  %v421_v24 = vld [vmem:[#allocation7 + $0x388] sm:$0xff]  ;;  %v846_v31 = vpack.c.bf16 %v418_v20, %v416_v17  ;;  %v356_v32 = vld [vmem:[#allocation7 + $0x180] sm:$0xff] }
  0x7c   : > { %831 = vmatpush1.bf16.msra.mxu0 %v830_v41  ;;  %769 = vmatprep.subr.bf16.mxu1 %v768_v42  ;;  %v423_v25 = vld [vmem:[#allocation7 + $0x398] sm:$0xff]  ;;  %v358_v33 = vld [vmem:[#allocation7 + $0x190] sm:$0xff]  ;;  %v784_v36 = vpack.c.bf16 %v359_v22, %v357_v21  ;;  %v420_v38 = vld [vmem:[#allocation7 + $0x380] sm:$0xff] }
  0x7d   : > { %833 = vmatprep.subr.bf16.mxu0 %v832_v46  ;;  %v201_v26 = vld [vmem:[%s1275_s16] sm:$0xff]  ;;  %v848_v37 = vpack.c.bf16 %v423_v25, %v421_v24  ;;  %v361_v40 = vld [vmem:[#allocation7 + $0x1a8] sm:$0xff]  ;;  %v786_v50 = vpack.c.bf16 %v358_v33, %v356_v32  ;;  %v424_v62 = vld [vmem:[#allocation7 + $0x3a0] sm:$0xff] }
  0x7e   : > { %v204_v27 = vcombine.high %v201_v26, %v201_v26  ;;  %v207_v28 = vsel %vm206_vm1, %v201_v26, 0.0  ;;  %v246_v29 = vsel %vm206_vm1, %v201_v26, -inf  ;;  %v422_v39 = vld [vmem:[#allocation7 + $0x390] sm:$0xff]  ;;  %v363_v43 = vld [vmem:[#allocation7 + $0x1b8] sm:$0xff]  ;;  %v425_v44 = vld [vmem:[#allocation7 + $0x3a8] sm:$0xff] }
  0x7f   : > { %771 = vmatpush1.bf16.msra.mxu1 %v770_v52  ;;  %v208_v34 = vrot.slane %v207_v28, 4  ;;  %v247_v35 = vrot.slane %v246_v29, 4  ;;  %v427_v45 = vld [vmem:[#allocation7 + $0x3b8] sm:$0xff]  ;;  %v225_v52 = vunpack.c.l.s4 %v1105_v51  ;;  %v850_v59 = vpack.c.bf16 %v422_v39, %v420_v38  ;;  %v426_v63 = vld [vmem:[#allocation7 + $0x3b0] sm:$0xff]  ;;  %v364_v20 = vld [vmem:[#allocation7 + $0x1c0] sm:$0xff] }
  0x80   : > { %835 = vmatpush1.bf16.msra.mxu0 %v834_v53  ;;  %773 = vmatprep.subr.bf16.mxu1 %v772_v54  ;;  %v214_v41 = vsel %vm206_vm1, %v204_v27, 0.0  ;;  %v253_v42 = vsel %vm206_vm1, %v204_v27, -inf  ;;  %v360_v53 = vld [vmem:[#allocation7 + $0x1a0] sm:$0xff]  ;;  %v362_v54 = vld [vmem:[#allocation7 + $0x1b0] sm:$0xff]  ;;  %v788_v60 = vpack.c.bf16 %v363_v43, %v361_v40  ;;  %v852_v61 = vpack.c.bf16 %v427_v45, %v425_v44  ;;  %v431_v5 = vld [vmem:[#allocation7 + $0x3d8] sm:$0xff] }
  0x81   : > { %837 = vmatprep.subr.bf16.mxu0 %v836_v58  ;;  %v209_v46 = vadd.f32 %v208_v34, %v207_v28  ;;  %v215_v47 = vrot.slane %v214_v41, 4  ;;  %v248_v48 = vmax.f32 %v246_v29, %v247_v35  ;;  %v254_v49 = vrot.slane %v253_v42, 4  ;;  %v366_v21 = vld [vmem:[#allocation7 + $0x1d0] sm:$0xff]  ;;  %v428_v22 = vld [vmem:[#allocation7 + $0x3c0] sm:$0xff]  ;;  %v369_v24 = vld [vmem:[#allocation7 + $0x1e8] sm:$0xff] }
  0x82   : > { %v790_v10 = vpack.c.bf16 %v362_v54, %v360_v53  ;;  %v226_v11 = vunpack.c.0.s8 %v225_v52  ;;  %v854_v17 = vpack.c.bf16 %v426_v63, %v424_v62  ;;  %v371_v25 = vld [vmem:[#allocation7 + $0x1f8] sm:$0xff]  ;;  %v433_v29 = vld [vmem:[#allocation7 + $0x3e8] sm:$0xff]  ;;  %v370_v38 = vld [vmem:[#allocation7 + $0x1f0] sm:$0xff]  ;;  %v293_v54 = vsub.s32 1, %v1300_v12 }
  0x83   : > { %775 = vmatpush1.bf16.msra.mxu1 %v774_v2  ;;  %v210_v55 = vrot.slane %v209_v46, 2  ;;  %v216_v56 = vadd.f32 %v215_v47, %v214_v41  ;;  %v249_v57 = vrot.slane %v248_v48, 2  ;;  %v255_v58 = vmax.f32 %v253_v42, %v254_v49  ;;  %v365_v2 = vld [vmem:[#allocation7 + $0x1c8] sm:$0xff]  ;;  %v432_v40 = vld [vmem:[#allocation7 + $0x3e0] sm:$0xff]  ;;  %v434_v41 = vld [vmem:[#allocation7 + $0x3f0] sm:$0xff] }
  0x84   : > { %839 = vmatpush1.bf16.msra.mxu0 %v838_v3  ;;  %777 = vmatprep.subr.bf16.mxu1 %v776_v4  ;;  %v367_v3 = vld [vmem:[#allocation7 + $0x1d8] sm:$0xff]  ;;  %v429_v4 = vld [vmem:[#allocation7 + $0x3c8] sm:$0xff]  ;;  %v1303_v33 = vsub.s32 %v226_v11, %v1300_v12  ;;  %v862_v47 = vpack.c.bf16 %v434_v41, %v432_v40 }
  0x85   : > { %841 = vmatprep.subr.bf16.mxu0 %v840_v8  ;;  %v211_v6 = vadd.f32 %v210_v55, %v209_v46  ;;  %v217_v7 = vrot.slane %v216_v56, 2  ;;  %v250_v8 = vmax.f32 %v248_v48, %v249_v57  ;;  %v256_v9 = vrot.slane %v255_v58, 2  ;;  %v202_v48 = vld [vmem:[#allocation2] sm:$0x3]  ;;  %v245_v49 = vld [vmem:[#allocation3] sm:$0x3] }
  0x86   : > { %v289_v55 = vsub.s32 0, %v1300_v12 }
  0x87   : > { %779 = vmatpush1.bf16.msra.mxu1 %v778_v14  ;;  %v212_v13 = vrot.slane %v211_v6, 1  ;;  %v218_v14 = vadd.f32 %v217_v7, %v216_v56  ;;  %v251_v15 = vrot.slane %v250_v8, 1  ;;  %v257_v16 = vmax.f32 %v255_v58, %v256_v9 }
  0x88   : > { %843 = vmatpush1.bf16.msra.mxu0 %v842_v18  ;;  %781 = vmatprep.subr.bf16.mxu1 %v780_v19  ;;  %v792_v18 = vpack.c.bf16 %v367_v3, %v365_v2  ;;  %v856_v19 = vpack.c.bf16 %v431_v5, %v429_v4 }
  0x89   : > { %845 = vmatprep.subr.bf16.mxu0 %v844_v23  ;;  %v430_v23 = vld [vmem:[#allocation7 + $0x3d0] sm:$0xff]  ;;  %v213_v26 = vadd.f32 %v212_v13, %v211_v6  ;;  %v219_v0 = vrot.slane %v218_v14, 1  ;;  %v252_v27 = vmax.f32 %v250_v8, %v251_v15  ;;  %v258_v28 = vrot.slane %v257_v16, 1 }
  0x8a   : > { %v858_v35 = vpack.c.bf16 %v430_v23, %v428_v22 }
  0x8b   : > { %783 = vmatpush1.bf16.msra.mxu1 %v782_v30  ;;  %v435_v30 = vld [vmem:[#allocation7 + $0x3f8] sm:$0xff]  ;;  %v220_v32 = vadd.f32 %v219_v0, %v218_v14  ;;  %v259_v34 = vmax.f32 %v257_v16, %v258_v28 }
  0x8c   : > { %847 = vmatpush1.bf16.msra.mxu0 %v846_v31  ;;  %785 = vmatprep.subr.bf16.mxu1 %v784_v36  ;;  %v794_v31 = vpack.c.bf16 %v366_v21, %v364_v20  ;;  %v796_v36 = vpack.c.bf16 %v371_v25, %v369_v24  ;;  %v860_v39 = vpack.c.bf16 %v435_v30, %v433_v29 }
  0x8d   : > { %849 = vmatprep.subr.bf16.mxu0 %v848_v37  ;;  %v368_v37 = vld [vmem:[#allocation7 + $0x1e0] sm:$0xff]  ;;  %v223_v42 = vcombine.low %v213_v26, %v220_v32  ;;  %v262_v43 = vcombine.low %v252_v27, %v259_v34 }
  0x8e   : > { %v798_v44 = vpack.c.bf16 %v370_v38, %v368_v37 }
  0x8f   : > { %787 = vmatpush1.bf16.msra.mxu1 %v786_v50  ;;  %v230_v45 = vrot.slane %v223_v42, %v1303_v33  ;;  %v269_v46 = vrot.slane %v262_v43, %v1303_v33 }
  0x90   : > { %851 = vmatpush1.bf16.msra.mxu0 %v850_v59  ;;  %789 = vmatprep.subr.bf16.mxu1 %v788_v60 }
  0x91   : > { %853 = vmatprep.subr.bf16.mxu0 %v852_v61  ;;  %v237_v50 = vrot.slane %v230_v45, %v1303_v33  ;;  %v276_v51 = vrot.slane %v269_v46, %v1303_v33 }
  0x93   : > { %791 = vmatpush1.bf16.msra.mxu1 %v790_v10  ;;  %v239_v52 = vadd.f32 %v237_v50, %v202_v48  ;;  %v278_v53 = vmax.f32 %v245_v49, %v276_v51 }
  0x94   : > { %855 = vmatpush1.bf16.msra.mxu0 %v854_v17  ;;  %793 = vmatprep.subr.bf16.mxu1 %v792_v18 }
  0x95   : > { %857 = vmatprep.subr.bf16.mxu0 %v856_v19  ;;  %244 = vst.msk [vmem:[#allocation2] sm:$0x3] %vm1286_vm0, %v239_v52  ;;  %279 = vst.msk [vmem:[#allocation3] sm:$0x3] %vm1286_vm0, %v278_v53 }
  0x97   : > { %795 = vmatpush1.bf16.msra.mxu1 %v794_v31 }
  0x98   : > { %859 = vmatpush1.bf16.msra.mxu0 %v858_v35  ;;  %797 = vmatprep.subr.bf16.mxu1 %v796_v36 }
  0x99   : > { %861 = vmatprep.subr.bf16.mxu0 %v860_v39 }
  0x9b   : > { %799 = vmatpush1.bf16.msra.mxu1 %v798_v44 }
  0x9c   : > { %863 = vmatpush1.bf16.msra.mxu0 %v862_v47  ;;  %v283_v56 = vld [vmem:[#allocation2] sm:$0x3]  ;;  %v285_v57 = vld [vmem:[#allocation3] sm:$0x3] }
  0x9d   : > { %v284_v58 = vmul.f32 0.25, %v283_v56  ;;  %v301_v59 = vrot.slane %v285_v57, %v289_v55  ;;  %v305_v60 = vrot.slane %v285_v57, %v293_v54 }
  0x9f   : > { %v294_v61 = vrot.slane %v284_v58, %v293_v54  ;;  %571 = vmatprep.mubr.f32.mxu0 %v305_v60  ;;  %v290_v62 = vrot.slane %v284_v58, %v289_v55 }
  0xa0   : > { %572 = vmatmul.mubr.f32.vlgmr.msra.gmra.mrb[0].mxu0 %v301_v59 }
  0xa1   : > { %500 = vmatprep.mubr.f32.mxu1 %v294_v61 }
  0xa2   : > { %501 = vmatmul.mubr.f32.vlgmr.msra.gmra.mrb[0].mxu1 %v290_v62 }
 0x173   : > { %v573_v63 = vpop.f32.mrb[0].mxu0 }
 0x174   : > { %v575_v2 = vpop.f32.mrb[1].mxu0 }
 0x175   : > { %v502_v3 = vpop.f32.mrb[0].mxu1 }
 0x176   : > { %v574_v4 = vadd.f32 %v573_v63, %v502_v3  ;;  %v504_v5 = vpop.f32.mrb[1].mxu1 }
 0x177   : > { %v576_v6 = vadd.f32 %v575_v2, %v504_v5 }
 0x178   : > { %v727_v7 = vmul.f32 -1.442695, %v574_v4 }
 0x179   : > { %v728_v8 = vmul.f32 -1.442695, %v576_v6 }
 0x17a   : > { %945 = vpow2.f32 %v727_v7 }
 0x17b   : > { %947 = vpow2.f32 %v728_v8 }
 0x184   : > { %v946_v9 = vpop.eup %945 }
 0x185   : > { %v948_v10 = vpop.eup %947  ;;  %v584_v11 = vadd.f32 1.0, %v946_v9 }
 0x186   : > { %v585_v12 = vadd.f32 1.0, %v948_v10 }
 0x187   : > { %949 = vrcp.f32 %v584_v11 }
 0x188   : > { %951 = vrcp.f32 %v585_v12 }
 0x191   : > { %v950_v13 = vpop.eup %949 }
 0x192   : > { %v952_v14 = vpop.eup %951 }
 0x193   : > { %v592_v15 = vcombine.low %v950_v13, %v952_v14 }
 0x195   : > { %v599_v16 = vrot.slane %v592_v15, %v1303_v33 }
 0x197   : > { %v606_v17 = vrot.slane %v599_v16, %v1303_v33 }
 0x199   : > { %608 = vst.msk [vmem:[%s190_s21] sm:$0x3] %vm1286_vm0, %v606_v17 }
 0x19a   : > { %1024 = shalt.err (!%p1021_p5)
}
 0x19b   : > { %s1025_s29 = scalar_lea.hbm %s1322_s7, 32  ;;  %s1029_s18 = scalar_lea.hbm %s1375_s2, 64 }
 0x19c   : > { %p1026_p9 = scmp.ne.s32.totalorder %s1322_s7, %s1025_s29  ;;  %p1030_p7 = scmp.lt.u32.totalorder %s1322_s7, %s1375_s2 }
 0x19d   : > { %p1031_p3 = scmp.lt.u32.totalorder %s1029_s18, %s1025_s29  ;;  %p1033_p4 = scmp.lt.u32.totalorder %s1025_s29, %s1322_s7 }
 0x19e   : > { %p1027_p1 = pnand %p1026_p9, %p1218_p10 }
 0x19f   : > { %p1032_p13 = por %p1031_p3, %p1030_p7 }
 0x1a0   : > { %p1028_p2 = pneg %p1027_p1 }
 0x1a1   : > { %p1034_p6 = por %p1033_p4, %p1032_p13 }
 0x1a3   : > { %p1035_p8 = pnand %p1034_p6, %p1028_p2 }
 0x1a5   : > { %1038 = shalt.err (!%p1035_p8)
}
 0x1a6   : > { %872 = dma.vmem_to_hbm [thread:$0]  (%p1218_p10), %s1324_s4, 32, %s1322_s7, %s610_s12  }
 0x1a7 PF: > { %s636_s16 = sand.u32 1, %s1077_s9   ;;  %p1395_p12 = scmp.ne.s32.totalorder %s1383_s20, 0 }
 0x1a8   : > { %p1396_p11 = scmp.ge.s32.totalorder %s1097_s14, 2  ;;  %s637_s17 = scalar_lea.sflag [#allocation6], %s636_s16 }
 0x1aa   : > { %p883_p0 = pnand %p1396_p11, %p1395_p12 }
 0x1ac   : > { %1072 = dma.done.wait (!%p883_p0), %s637_s17, 32  }
 0x1ad   : > { %1074 = vsyncadd (!%p883_p0), %s637_s17, 4294967264  ;;  %s19_s14 = sadd.s32 1, %s1097_s14   ;;  %s1397_s9 = smov %s1081_s10 }
 0x1ae   : > { %p16_p5 = scmp.ge.s32.totalorder %s19_s14, 4   ;;  %s1398_s10 = smov %s1085_s11 }
 0x1af   : > { %s1399_s11 = smov %s1227_s28  ;;  %s1400_s12 = smov %s1093_s13 }
 0x1b0   : > { %s1401_s13 = smov %s1403_s25  ;;  %18 = sbr.rel (!%p16_p5) target bundleno = 7 (0x7), region = 85 }
 0x1b7   :  { %642 = vsyncpa [#allocation5], 1 }
 0x1b8   :  { %644 = vsyncpa [#allocation5 + $0x1], 1 }
 0x1b9   :  { %645 = vsyncpa [#allocation8], 1 }
 0x1ba   :  { %646 = vsyncpa [#allocation6], 1 }
 0x1bb   :  { %648 = vsyncpa [#allocation6 + $0x1], 1 }

</bundles_post_ra>
